<compile_context>
chip_gen: v6e
topology: v6e:2x2x1
jax: 0.10.0
libtpu: 0.0.40
codegen_flags: <defaults>
</compile_context>

<pallas_src>
import math

import jax
import jax.numpy as jnp
from jax.experimental import pallas as pl
from jax.experimental.pallas import tpu as pltpu


def _make_msa_kernel(heads: int, head_dim: int, block_b: int, nq: int, nk: int):
    def kernel(q_ref, k_ref, v_ref,
               wq_ref, bq_ref, wk_ref, bk_ref, wv_ref, bv_ref,
               wo_ref, bo_ref, o_ref):
        dim = q_ref.shape[-1]
        inner_dim = wq_ref.shape[1]
        dim_out = wo_ref.shape[1]
        mxu_dtype = wq_ref.dtype   # bf16 by default; f32 for the parity path.

        # Fold the batch tile into the row (sublane) dimension so each
        # projection is one large MXU matmul with f32 accumulation.
        # (nq/nk are multiples of 8 here, so these reshapes are free.)
        xq = q_ref[...].reshape(block_b * nq, dim)
        xk = k_ref[...].reshape(block_b * nk, dim)
        xv = v_ref[...].reshape(block_b * nk, dim)

        # The softmax scale is pre-folded into Wq/bq by the wrapper.
        qp = jnp.dot(xq, wq_ref[...], preferred_element_type=jnp.float32) + bq_ref[...]
        kp = jnp.dot(xk, wk_ref[...], preferred_element_type=jnp.float32) + bk_ref[...]
        vp = jnp.dot(xv, wv_ref[...], preferred_element_type=jnp.float32) + bv_ref[...]

        q3 = qp.reshape(block_b, nq, inner_dim).astype(mxu_dtype)
        k3 = kp.reshape(block_b, nk, inner_dim).astype(mxu_dtype)
        v3 = vp.reshape(block_b, nk, inner_dim).astype(mxu_dtype)

        # Per-head attention.  Each head's context is folded straight into the
        # output projection via a sublane slice of Wo -- no lane-offset masked
        # scratch stores and no (rows, inner) f32 VMEM round trip.
        y = jnp.zeros((block_b * nq, dim_out), jnp.float32)
        for h in range(heads):
            lo = h * head_dim
            hi = lo + head_dim
            qh = q3[:, :, lo:hi]                       # (block_b, nq, hd)
            kh = k3[:, :, lo:hi]                       # (block_b, nk, hd)
            vh = v3[:, :, lo:hi]                       # (block_b, nk, hd)

            # Batched Q.K^T; K consumed transposed by the MXU (no explicit .T).
            scores = jnp.einsum("bqd,bkd->bqk", qh, kh,
                                preferred_element_type=jnp.float32)
            # Numerically stable softmax along keys; all statistics in f32.
            m = jnp.max(scores, axis=-1, keepdims=True)
            p = jnp.exp(scores - m)
            denom = jnp.sum(p, axis=-1, keepdims=True)
            attn = (p * pl.reciprocal(denom, approx=True)).astype(mxu_dtype)

            out_h = jnp.einsum("bqk,bkd->bqd", attn, vh,
                               preferred_element_type=jnp.float32)
            out_h = out_h.reshape(block_b * nq, head_dim).astype(mxu_dtype)
            # Per-head slab of the output projection (sublane slice: cheap).
            y = y + jnp.dot(out_h, wo_ref[lo:hi, :],
                            preferred_element_type=jnp.float32)

        y = y + bo_ref[...]                            # single f32 bias add
        o_ref[...] = y.reshape(block_b, nq, dim_out).astype(o_ref.dtype)

    return kernel


def _tpu_kind() -> str:
    try:
        return jax.devices()[0].device_kind.lower()
    except Exception:
        return ""


def _pick_block_batch(B: int, nq: int, nk: int, dim: int, inner_dim: int,
                      itemsize: int = 2) -> int:
    """Generation-aware batch tile.

    v7x: keep >= 2 grid steps (2 TensorCores) and budget for 64 MiB VMEM.
    v5e/v6e: single TensorCore -> min_grid=1; grow the folded row count toward
    the MXU width (512 rows for the 256-wide v6e/v7x MXU, 256 for v5e).
    """
    kind = _tpu_kind()
    is_v7 = ("v7" in kind) or ("7x" in kind)
    wide_mxu = is_v7 or ("v6" in kind)
    min_grid = 2 if is_v7 else 1
    target_rows = 512 if wide_mxu else 256
    vmem_budget = (24 << 20) if is_v7 else (48 << 20)

    def step_bytes(bb):
        rows_q, rows_k = bb * nq, bb * nk
        tiles = 2 * (rows_q + 2 * rows_k) * dim * itemsize      # 2x-buffered q/k/v
        weights = 2 * 4 * dim * inner_dim * itemsize            # 4 weights, 2 buffers
        proj = (rows_q + 2 * rows_k) * inner_dim * 4            # f32 projections
        attn = 3 * bb * nq * nk * 4                             # scores / p / attn
        outs = 3 * rows_q * dim * 4                             # accumulator + out tile
        return tiles + weights + proj + attn + outs

    divisors = [d for d in range(1, B + 1) if B % d == 0]
    ok = [d for d in divisors
          if d * nq <= target_rows and step_bytes(d) <= vmem_budget] or [1]
    with_par = [d for d in ok if (B // d) >= min_grid]
    return max(with_par) if with_par else max(ok)


def multi_scale_attention(q, k, v, params, *, heads: int, block_b=None,
                          mxu_dtype=jnp.bfloat16):
    """q: (B, nq, dim), k/v: (B, nk, dim). Returns (B, nq, dim)."""
    B, nq, dim = q.shape
    nk = k.shape[1]
    inner_dim = params["wq"].shape[1]
    assert inner_dim % heads == 0, "inner_dim must be divisible by heads"
    head_dim = inner_dim // heads
    scale = float(head_dim) ** -0.5
    itemsize = jnp.dtype(mxu_dtype).itemsize

    if block_b is None:
        block_b = _pick_block_batch(B, nq, nk, dim, inner_dim, itemsize=itemsize)
    assert B % block_b == 0, "block_b must divide the batch size"

    # Feed the MXU its native dtype (bf16 by default); biases and all
    # accumulation stay f32.  Fold the softmax scale into the q projection.
    wq = (params["wq"] * scale).astype(mxu_dtype)
    bq = (params["bq"] * scale).astype(jnp.float32)
    wk = params["wk"].astype(mxu_dtype)
    bk = params["bk"].astype(jnp.float32)
    wv = params["wv"].astype(mxu_dtype)
    bv = params["bv"].astype(jnp.float32)
    wo = params["wo"].astype(mxu_dtype)
    bo = params["bo"].astype(jnp.float32)
    qx = q.astype(mxu_dtype)
    kx = k.astype(mxu_dtype)
    vx = v.astype(mxu_dtype)

    kernel = _make_msa_kernel(heads, head_dim, block_b, nq, nk)
    full2d = lambda shape: pl.BlockSpec(shape, lambda b: (0, 0))

    # Explicit VMEM budget (v7x only has 64 MiB physical / 32 MiB default).
    rows_q, rows_k = block_b * nq, block_b * nk
    est = (2 * (rows_q + 2 * rows_k) * dim * itemsize
           + 2 * 4 * dim * inner_dim * itemsize
           + (rows_q + 2 * rows_k) * inner_dim * 4
           + 3 * block_b * nq * nk * 4
           + 3 * rows_q * dim * 4)
    vmem_limit = int(min(64 << 20, max(32 << 20, 2 * est)))

    return pl.pallas_call(
        kernel,
        out_shape=jax.ShapeDtypeStruct((B, nq, dim), q.dtype),
        grid_spec=pltpu.PrefetchScalarGridSpec(
            num_scalar_prefetch=0,
            grid=(B // block_b,),
            in_specs=[
                pl.BlockSpec((block_b, nq, dim), lambda b: (b, 0, 0)),   # q
                pl.BlockSpec((block_b, nk, dim), lambda b: (b, 0, 0)),   # k
                pl.BlockSpec((block_b, nk, dim), lambda b: (b, 0, 0)),   # v
                full2d((dim, inner_dim)),                                # Wq (scaled)
                full2d((1, inner_dim)),                                  # bq (scaled)
                full2d((dim, inner_dim)),                                # Wk
                full2d((1, inner_dim)),                                  # bk
                full2d((dim, inner_dim)),                                # Wv
                full2d((1, inner_dim)),                                  # bv
                full2d((inner_dim, dim)),                                # Wout
                full2d((1, dim)),                                        # bout
            ],
            out_specs=pl.BlockSpec((block_b, nq, dim), lambda b: (b, 0, 0)),
        ),
        compiler_params=pltpu.CompilerParams(
            dimension_semantics=("parallel",),
            vmem_limit_bytes=vmem_limit),
    )(qx, kx, vx, wq, bq, wk, bk, wv, bv, wo, bo)


def init_params(key, dim: int, inner_dim: int):
    """Deterministic nn.Linear-style init. Weights stored (in, out), f32."""
    def linear(k, fan_in, fan_out):
        kw, kb = jax.random.split(k)
        bound = 1.0 / math.sqrt(fan_in)
        w = jax.random.uniform(kw, (fan_in, fan_out), jnp.float32, -bound, bound)
        b = jax.random.uniform(kb, (1, fan_out), jnp.float32, -bound, bound)
        return w, b

    k1, k2, k3, k4 = jax.random.split(key, 4)
    wq, bq = linear(k1, dim, inner_dim)
    wk, bk = linear(k2, dim, inner_dim)
    wv, bv = linear(k3, dim, inner_dim)
    wo, bo = linear(k4, inner_dim, dim)
    return dict(wq=wq, bq=bq, wk=wk, bk=bk, wv=wv, bv=bv, wo=wo, bo=bo)


def reference(q, k, v, params, *, heads: int):
    """Pure-JAX fp32 replica of the PyTorch forward, for validation."""
    B, nq, dim = q.shape
    nk = k.shape[1]
    inner_dim = params["wq"].shape[1]
    hd = inner_dim // heads

    qp = q @ params["wq"] + params["bq"]
    kp = k @ params["wk"] + params["bk"]
    vp = v @ params["wv"] + params["bv"]
    qp = qp.reshape(B, nq, heads, hd).transpose(0, 2, 1, 3)
    kp = kp.reshape(B, nk, heads, hd).transpose(0, 2, 1, 3)
    vp = vp.reshape(B, nk, heads, hd).transpose(0, 2, 1, 3)
    scores = jnp.einsum("bhqd,bhkd->bhqk", qp, kp) * (hd ** -0.5)
    attn = jax.nn.softmax(scores, axis=-1)
    out = jnp.einsum("bhqk,bhkd->bhqd", attn, vp)
    out = out.transpose(0, 2, 1, 3).reshape(B, nq, inner_dim)
    return out @ params["wo"] + params["bo"]


if __name__ == "__main__":
    # Small shapes consistent with the module: dim=32, heads=4, scale_ratio=1.
    B, NQ, NK, DIM, HEADS, SCALE_RATIO = 2, 8, 8, 32, 4, 1
    INNER = DIM // SCALE_RATIO

    key = jax.random.PRNGKey(0)
    kq, kk, kv, kp = jax.random.split(key, 4)
    q = jax.random.normal(kq, (B, NQ, DIM), jnp.float32)
    k = jax.random.normal(kk, (B, NK, DIM), jnp.float32)
    v = jax.random.normal(kv, (B, NK, DIM), jnp.float32)
    params = init_params(kp, DIM, INNER)

    ref = reference(q, k, v, params, heads=HEADS)

    # fp32-MXU path: tight parity with the fp32 reference (approx EUP
    # reciprocal in the softmax denominator is the only deviation).
    out_f32 = jax.block_until_ready(
        multi_scale_attention(q, k, v, params, heads=HEADS, mxu_dtype=jnp.float32))
    assert out_f32.shape == (B, NQ, DIM)
    assert jnp.allclose(out_f32, ref, atol=5e-3, rtol=5e-3), \
        f"f32 path max abs err {jnp.max(jnp.abs(out_f32 - ref))}"

    # Default bf16-MXU path (native MXU dtype; f32 accumulation / softmax).
    out = jax.block_until_ready(
        multi_scale_attention(q, k, v, params, heads=HEADS))
    assert out.shape == (B, NQ, DIM)
    assert jnp.allclose(out, ref, atol=5e-2, rtol=5e-2), \
        f"bf16 path max abs err {jnp.max(jnp.abs(out - ref))}"

    # Also exercise the fully folded-batch path (all batches in one grid step).
    out_folded = jax.block_until_ready(
        multi_scale_attention(q, k, v, params, heads=HEADS, block_b=B))
    assert jnp.allclose(out_folded, ref, atol=5e-2, rtol=5e-2), \
        f"folded max abs err {jnp.max(jnp.abs(out_folded - ref))}"

    print("KERNEL_OK")
</pallas_src>

<mosaic_0001>
module attributes {stable_mosaic.version = 11 : i64} {
  func.func @kernel(%arg0: i32, %arg1: memref<2x8x32xf32, #tpu.memory_space<vmem>>, %arg2: memref<2x8x32xf32, #tpu.memory_space<vmem>>, %arg3: memref<2x8x32xf32, #tpu.memory_space<vmem>>, %arg4: memref<32x32xf32, #tpu.memory_space<vmem>>, %arg5: memref<1x32xf32, #tpu.memory_space<vmem>>, %arg6: memref<32x32xf32, #tpu.memory_space<vmem>>, %arg7: memref<1x32xf32, #tpu.memory_space<vmem>>, %arg8: memref<32x32xf32, #tpu.memory_space<vmem>>, %arg9: memref<1x32xf32, #tpu.memory_space<vmem>>, %arg10: memref<32x32xf32, #tpu.memory_space<vmem>>, %arg11: memref<1x32xf32, #tpu.memory_space<vmem>>, %arg12: memref<2x8x32xf32, #tpu.memory_space<vmem>>) attributes {dimension_semantics = [#tpu.dimension_semantics<parallel>], iteration_bounds = array<i64: 1>, scalar_prefetch = 0 : i64, scratch_operands = 0 : i64, tpu.core_type = #tpu.core_type<tc>, window_params = [{transform_indices = @transform_0, window_bounds = array<i64: 2, 8, 32>}, {transform_indices = @transform_1, window_bounds = array<i64: 2, 8, 32>}, {transform_indices = @transform_2, window_bounds = array<i64: 2, 8, 32>}, {pipeline_mode = #tpu.pipeline_mode<synchronous>, transform_indices = @transform_3, window_bounds = array<i64: 32, 32>}, {pipeline_mode = #tpu.pipeline_mode<synchronous>, transform_indices = @transform_4, window_bounds = array<i64: 1, 32>}, {pipeline_mode = #tpu.pipeline_mode<synchronous>, transform_indices = @transform_5, window_bounds = array<i64: 32, 32>}, {pipeline_mode = #tpu.pipeline_mode<synchronous>, transform_indices = @transform_6, window_bounds = array<i64: 1, 32>}, {pipeline_mode = #tpu.pipeline_mode<synchronous>, transform_indices = @transform_7, window_bounds = array<i64: 32, 32>}, {pipeline_mode = #tpu.pipeline_mode<synchronous>, transform_indices = @transform_8, window_bounds = array<i64: 1, 32>}, {pipeline_mode = #tpu.pipeline_mode<synchronous>, transform_indices = @transform_9, window_bounds = array<i64: 32, 32>}, {pipeline_mode = #tpu.pipeline_mode<synchronous>, transform_indices = @transform_10, window_bounds = array<i64: 1, 32>}, {transform_indices = @transform_11, window_bounds = array<i64: 2, 8, 32>}]} {
    %c0 = arith.constant 0 : index
    %c0_0 = arith.constant 0 : index
    %c0_1 = arith.constant 0 : index
    %0 = vector.load %arg1[%c0, %c0_0, %c0_1] : memref<2x8x32xf32, #tpu.memory_space<vmem>>, vector<2x8x32xf32>
    %1 = vector.shape_cast %0 : vector<2x8x32xf32> to vector<16x32xf32>
    %c0_2 = arith.constant 0 : index
    %c0_3 = arith.constant 0 : index
    %c0_4 = arith.constant 0 : index
    %2 = vector.load %arg2[%c0_2, %c0_3, %c0_4] : memref<2x8x32xf32, #tpu.memory_space<vmem>>, vector<2x8x32xf32>
    %3 = vector.shape_cast %2 : vector<2x8x32xf32> to vector<16x32xf32>
    %c0_5 = arith.constant 0 : index
    %c0_6 = arith.constant 0 : index
    %c0_7 = arith.constant 0 : index
    %4 = vector.load %arg3[%c0_5, %c0_6, %c0_7] : memref<2x8x32xf32, #tpu.memory_space<vmem>>, vector<2x8x32xf32>
    %5 = vector.shape_cast %4 : vector<2x8x32xf32> to vector<16x32xf32>
    %c0_8 = arith.constant 0 : index
    %c0_9 = arith.constant 0 : index
    %6 = vector.load %arg4[%c0_8, %c0_9] : memref<32x32xf32, #tpu.memory_space<vmem>>, vector<32x32xf32>
    %cst = arith.constant dense<0.000000e+00> : vector<16x32xf32>
    %7 = tpu.matmul %1, %6, %cst {dimension_numbers = #tpu.dot_dimension_numbers<[1], [0], [0], [1], [0, 0, 1, 1], [], []>} : vector<16x32xf32>, vector<32x32xf32>, vector<16x32xf32> -> vector<16x32xf32>
    %c0_10 = arith.constant 0 : index
    %c0_11 = arith.constant 0 : index
    %8 = vector.load %arg5[%c0_10, %c0_11] : memref<1x32xf32, #tpu.memory_space<vmem>>, vector<1x32xf32>
    %9 = vector.broadcast %8 : vector<1x32xf32> to vector<16x32xf32>
    %10 = arith.addf %7, %9 : vector<16x32xf32>
    %c0_12 = arith.constant 0 : index
    %c0_13 = arith.constant 0 : index
    %11 = vector.load %arg6[%c0_12, %c0_13] : memref<32x32xf32, #tpu.memory_space<vmem>>, vector<32x32xf32>
    %cst_14 = arith.constant dense<0.000000e+00> : vector<16x32xf32>
    %12 = tpu.matmul %3, %11, %cst_14 {dimension_numbers = #tpu.dot_dimension_numbers<[1], [0], [0], [1], [0, 0, 1, 1], [], []>} : vector<16x32xf32>, vector<32x32xf32>, vector<16x32xf32> -> vector<16x32xf32>
    %c0_15 = arith.constant 0 : index
    %c0_16 = arith.constant 0 : index
    %13 = vector.load %arg7[%c0_15, %c0_16] : memref<1x32xf32, #tpu.memory_space<vmem>>, vector<1x32xf32>
    %14 = vector.broadcast %13 : vector<1x32xf32> to vector<16x32xf32>
    %15 = arith.addf %12, %14 : vector<16x32xf32>
    %c0_17 = arith.constant 0 : index
    %c0_18 = arith.constant 0 : index
    %16 = vector.load %arg8[%c0_17, %c0_18] : memref<32x32xf32, #tpu.memory_space<vmem>>, vector<32x32xf32>
    %cst_19 = arith.constant dense<0.000000e+00> : vector<16x32xf32>
    %17 = tpu.matmul %5, %16, %cst_19 {dimension_numbers = #tpu.dot_dimension_numbers<[1], [0], [0], [1], [0, 0, 1, 1], [], []>} : vector<16x32xf32>, vector<32x32xf32>, vector<16x32xf32> -> vector<16x32xf32>
    %c0_20 = arith.constant 0 : index
    %c0_21 = arith.constant 0 : index
    %18 = vector.load %arg9[%c0_20, %c0_21] : memref<1x32xf32, #tpu.memory_space<vmem>>, vector<1x32xf32>
    %19 = vector.broadcast %18 : vector<1x32xf32> to vector<16x32xf32>
    %20 = arith.addf %17, %19 : vector<16x32xf32>
    %21 = vector.shape_cast %10 : vector<16x32xf32> to vector<2x8x32xf32>
    %22 = vector.shape_cast %15 : vector<16x32xf32> to vector<2x8x32xf32>
    %23 = vector.shape_cast %20 : vector<16x32xf32> to vector<2x8x32xf32>
    %cst_22 = arith.constant 0.000000e+00 : f32
    %24 = vector.broadcast %cst_22 : f32 to vector<16x32xf32>
    %25 = vector.extract_strided_slice %21 {offsets = [0, 0, 0], sizes = [2, 8, 8], strides = [1, 1, 1]} : vector<2x8x32xf32> to vector<2x8x8xf32>
    %26 = vector.extract_strided_slice %22 {offsets = [0, 0, 0], sizes = [2, 8, 8], strides = [1, 1, 1]} : vector<2x8x32xf32> to vector<2x8x8xf32>
    %27 = vector.extract_strided_slice %23 {offsets = [0, 0, 0], sizes = [2, 8, 8], strides = [1, 1, 1]} : vector<2x8x32xf32> to vector<2x8x8xf32>
    "tpu.trace_start"() <{level = 10 : i32, message = "bqd,bkd->bqk"}> : () -> ()
    %cst_23 = arith.constant dense<0.000000e+00> : vector<2x8x8xf32>
    %28 = tpu.matmul %25, %26, %cst_23 {dimension_numbers = #tpu.dot_dimension_numbers<[2], [2], [1], [1], [0, 0, 0, 1, 1, 1], [0], [0]>} : vector<2x8x8xf32>, vector<2x8x8xf32>, vector<2x8x8xf32> -> vector<2x8x8xf32>
    "tpu.trace_stop"() : () -> ()
    %cst_24 = arith.constant dense<0xFF800000> : vector<2x8xf32>
    %29 = vector.multi_reduction <maximumf>, %28, %cst_24 [2] : vector<2x8x8xf32> to vector<2x8xf32>
    %30 = vector.shape_cast %29 : vector<2x8xf32> to vector<2x8x1xf32>
    %31 = vector.broadcast %30 : vector<2x8x1xf32> to vector<2x8x8xf32>
    %32 = arith.subf %28, %31 : vector<2x8x8xf32>
    %33 = math.exp %32 : vector<2x8x8xf32>
    %cst_25 = arith.constant dense<0.000000e+00> : vector<2x8xf32>
    %34 = vector.multi_reduction <add>, %33, %cst_25 [2] : vector<2x8x8xf32> to vector<2x8xf32>
    %35 = vector.shape_cast %34 : vector<2x8xf32> to vector<2x8x1xf32>
    %36 = tpu.reciprocal %35 {approx = true} : vector<2x8x1xf32> -> vector<2x8x1xf32>
    %37 = vector.broadcast %36 : vector<2x8x1xf32> to vector<2x8x8xf32>
    %38 = arith.mulf %33, %37 : vector<2x8x8xf32>
    "tpu.trace_start"() <{level = 10 : i32, message = "bqk,bkd->bqd"}> : () -> ()
    %cst_26 = arith.constant dense<0.000000e+00> : vector<2x8x8xf32>
    %39 = tpu.matmul %38, %27, %cst_26 {dimension_numbers = #tpu.dot_dimension_numbers<[2], [1], [1], [2], [0, 0, 0, 1, 1, 2], [0], [0]>} : vector<2x8x8xf32>, vector<2x8x8xf32>, vector<2x8x8xf32> -> vector<2x8x8xf32>
    "tpu.trace_stop"() : () -> ()
    %40 = vector.shape_cast %39 : vector<2x8x8xf32> to vector<16x8xf32>
    %c0_27 = arith.constant 0 : index
    %c0_28 = arith.constant 0 : index
    %41 = vector.load %arg10[%c0_27, %c0_28] : memref<32x32xf32, #tpu.memory_space<vmem>>, vector<8x32xf32>
    %cst_29 = arith.constant dense<0.000000e+00> : vector<16x32xf32>
    %42 = tpu.matmul %40, %41, %cst_29 {dimension_numbers = #tpu.dot_dimension_numbers<[1], [0], [0], [1], [0, 0, 1, 1], [], []>} : vector<16x8xf32>, vector<8x32xf32>, vector<16x32xf32> -> vector<16x32xf32>
    %43 = arith.addf %24, %42 : vector<16x32xf32>
    %44 = vector.extract_strided_slice %21 {offsets = [0, 0, 8], sizes = [2, 8, 8], strides = [1, 1, 1]} : vector<2x8x32xf32> to vector<2x8x8xf32>
    %45 = vector.extract_strided_slice %22 {offsets = [0, 0, 8], sizes = [2, 8, 8], strides = [1, 1, 1]} : vector<2x8x32xf32> to vector<2x8x8xf32>
    %46 = vector.extract_strided_slice %23 {offsets = [0, 0, 8], sizes = [2, 8, 8], strides = [1, 1, 1]} : vector<2x8x32xf32> to vector<2x8x8xf32>
    "tpu.trace_start"() <{level = 10 : i32, message = "bqd,bkd->bqk"}> : () -> ()
    %cst_30 = arith.constant dense<0.000000e+00> : vector<2x8x8xf32>
    %47 = tpu.matmul %44, %45, %cst_30 {dimension_numbers = #tpu.dot_dimension_numbers<[2], [2], [1], [1], [0, 0, 0, 1, 1, 1], [0], [0]>} : vector<2x8x8xf32>, vector<2x8x8xf32>, vector<2x8x8xf32> -> vector<2x8x8xf32>
    "tpu.trace_stop"() : () -> ()
    %cst_31 = arith.constant dense<0xFF800000> : vector<2x8xf32>
    %48 = vector.multi_reduction <maximumf>, %47, %cst_31 [2] : vector<2x8x8xf32> to vector<2x8xf32>
    %49 = vector.shape_cast %48 : vector<2x8xf32> to vector<2x8x1xf32>
    %50 = vector.broadcast %49 : vector<2x8x1xf32> to vector<2x8x8xf32>
    %51 = arith.subf %47, %50 : vector<2x8x8xf32>
    %52 = math.exp %51 : vector<2x8x8xf32>
    %cst_32 = arith.constant dense<0.000000e+00> : vector<2x8xf32>
    %53 = vector.multi_reduction <add>, %52, %cst_32 [2] : vector<2x8x8xf32> to vector<2x8xf32>
    %54 = vector.shape_cast %53 : vector<2x8xf32> to vector<2x8x1xf32>
    %55 = tpu.reciprocal %54 {approx = true} : vector<2x8x1xf32> -> vector<2x8x1xf32>
    %56 = vector.broadcast %55 : vector<2x8x1xf32> to vector<2x8x8xf32>
    %57 = arith.mulf %52, %56 : vector<2x8x8xf32>
    "tpu.trace_start"() <{level = 10 : i32, message = "bqk,bkd->bqd"}> : () -> ()
    %cst_33 = arith.constant dense<0.000000e+00> : vector<2x8x8xf32>
    %58 = tpu.matmul %57, %46, %cst_33 {dimension_numbers = #tpu.dot_dimension_numbers<[2], [1], [1], [2], [0, 0, 0, 1, 1, 2], [0], [0]>} : vector<2x8x8xf32>, vector<2x8x8xf32>, vector<2x8x8xf32> -> vector<2x8x8xf32>
    "tpu.trace_stop"() : () -> ()
    %59 = vector.shape_cast %58 : vector<2x8x8xf32> to vector<16x8xf32>
    %c8 = arith.constant 8 : index
    %c0_34 = arith.constant 0 : index
    %60 = vector.load %arg10[%c8, %c0_34] : memref<32x32xf32, #tpu.memory_space<vmem>>, vector<8x32xf32>
    %cst_35 = arith.constant dense<0.000000e+00> : vector<16x32xf32>
    %61 = tpu.matmul %59, %60, %cst_35 {dimension_numbers = #tpu.dot_dimension_numbers<[1], [0], [0], [1], [0, 0, 1, 1], [], []>} : vector<16x8xf32>, vector<8x32xf32>, vector<16x32xf32> -> vector<16x32xf32>
    %62 = arith.addf %43, %61 : vector<16x32xf32>
    %63 = vector.extract_strided_slice %21 {offsets = [0, 0, 16], sizes = [2, 8, 8], strides = [1, 1, 1]} : vector<2x8x32xf32> to vector<2x8x8xf32>
    %64 = vector.extract_strided_slice %22 {offsets = [0, 0, 16], sizes = [2, 8, 8], strides = [1, 1, 1]} : vector<2x8x32xf32> to vector<2x8x8xf32>
    %65 = vector.extract_strided_slice %23 {offsets = [0, 0, 16], sizes = [2, 8, 8], strides = [1, 1, 1]} : vector<2x8x32xf32> to vector<2x8x8xf32>
    "tpu.trace_start"() <{level = 10 : i32, message = "bqd,bkd->bqk"}> : () -> ()
    %cst_36 = arith.constant dense<0.000000e+00> : vector<2x8x8xf32>
    %66 = tpu.matmul %63, %64, %cst_36 {dimension_numbers = #tpu.dot_dimension_numbers<[2], [2], [1], [1], [0, 0, 0, 1, 1, 1], [0], [0]>} : vector<2x8x8xf32>, vector<2x8x8xf32>, vector<2x8x8xf32> -> vector<2x8x8xf32>
    "tpu.trace_stop"() : () -> ()
    %cst_37 = arith.constant dense<0xFF800000> : vector<2x8xf32>
    %67 = vector.multi_reduction <maximumf>, %66, %cst_37 [2] : vector<2x8x8xf32> to vector<2x8xf32>
    %68 = vector.shape_cast %67 : vector<2x8xf32> to vector<2x8x1xf32>
    %69 = vector.broadcast %68 : vector<2x8x1xf32> to vector<2x8x8xf32>
    %70 = arith.subf %66, %69 : vector<2x8x8xf32>
    %71 = math.exp %70 : vector<2x8x8xf32>
    %cst_38 = arith.constant dense<0.000000e+00> : vector<2x8xf32>
    %72 = vector.multi_reduction <add>, %71, %cst_38 [2] : vector<2x8x8xf32> to vector<2x8xf32>
    %73 = vector.shape_cast %72 : vector<2x8xf32> to vector<2x8x1xf32>
    %74 = tpu.reciprocal %73 {approx = true} : vector<2x8x1xf32> -> vector<2x8x1xf32>
    %75 = vector.broadcast %74 : vector<2x8x1xf32> to vector<2x8x8xf32>
    %76 = arith.mulf %71, %75 : vector<2x8x8xf32>
    "tpu.trace_start"() <{level = 10 : i32, message = "bqk,bkd->bqd"}> : () -> ()
    %cst_39 = arith.constant dense<0.000000e+00> : vector<2x8x8xf32>
    %77 = tpu.matmul %76, %65, %cst_39 {dimension_numbers = #tpu.dot_dimension_numbers<[2], [1], [1], [2], [0, 0, 0, 1, 1, 2], [0], [0]>} : vector<2x8x8xf32>, vector<2x8x8xf32>, vector<2x8x8xf32> -> vector<2x8x8xf32>
    "tpu.trace_stop"() : () -> ()
    %78 = vector.shape_cast %77 : vector<2x8x8xf32> to vector<16x8xf32>
    %c16 = arith.constant 16 : index
    %c0_40 = arith.constant 0 : index
    %79 = vector.load %arg10[%c16, %c0_40] : memref<32x32xf32, #tpu.memory_space<vmem>>, vector<8x32xf32>
    %cst_41 = arith.constant dense<0.000000e+00> : vector<16x32xf32>
    %80 = tpu.matmul %78, %79, %cst_41 {dimension_numbers = #tpu.dot_dimension_numbers<[1], [0], [0], [1], [0, 0, 1, 1], [], []>} : vector<16x8xf32>, vector<8x32xf32>, vector<16x32xf32> -> vector<16x32xf32>
    %81 = arith.addf %62, %80 : vector<16x32xf32>
    %82 = vector.extract_strided_slice %21 {offsets = [0, 0, 24], sizes = [2, 8, 8], strides = [1, 1, 1]} : vector<2x8x32xf32> to vector<2x8x8xf32>
    %83 = vector.extract_strided_slice %22 {offsets = [0, 0, 24], sizes = [2, 8, 8], strides = [1, 1, 1]} : vector<2x8x32xf32> to vector<2x8x8xf32>
    %84 = vector.extract_strided_slice %23 {offsets = [0, 0, 24], sizes = [2, 8, 8], strides = [1, 1, 1]} : vector<2x8x32xf32> to vector<2x8x8xf32>
    "tpu.trace_start"() <{level = 10 : i32, message = "bqd,bkd->bqk"}> : () -> ()
    %cst_42 = arith.constant dense<0.000000e+00> : vector<2x8x8xf32>
    %85 = tpu.matmul %82, %83, %cst_42 {dimension_numbers = #tpu.dot_dimension_numbers<[2], [2], [1], [1], [0, 0, 0, 1, 1, 1], [0], [0]>} : vector<2x8x8xf32>, vector<2x8x8xf32>, vector<2x8x8xf32> -> vector<2x8x8xf32>
    "tpu.trace_stop"() : () -> ()
    %cst_43 = arith.constant dense<0xFF800000> : vector<2x8xf32>
    %86 = vector.multi_reduction <maximumf>, %85, %cst_43 [2] : vector<2x8x8xf32> to vector<2x8xf32>
    %87 = vector.shape_cast %86 : vector<2x8xf32> to vector<2x8x1xf32>
    %88 = vector.broadcast %87 : vector<2x8x1xf32> to vector<2x8x8xf32>
    %89 = arith.subf %85, %88 : vector<2x8x8xf32>
    %90 = math.exp %89 : vector<2x8x8xf32>
    %cst_44 = arith.constant dense<0.000000e+00> : vector<2x8xf32>
    %91 = vector.multi_reduction <add>, %90, %cst_44 [2] : vector<2x8x8xf32> to vector<2x8xf32>
    %92 = vector.shape_cast %91 : vector<2x8xf32> to vector<2x8x1xf32>
    %93 = tpu.reciprocal %92 {approx = true} : vector<2x8x1xf32> -> vector<2x8x1xf32>
    %94 = vector.broadcast %93 : vector<2x8x1xf32> to vector<2x8x8xf32>
    %95 = arith.mulf %90, %94 : vector<2x8x8xf32>
    "tpu.trace_start"() <{level = 10 : i32, message = "bqk,bkd->bqd"}> : () -> ()
    %cst_45 = arith.constant dense<0.000000e+00> : vector<2x8x8xf32>
    %96 = tpu.matmul %95, %84, %cst_45 {dimension_numbers = #tpu.dot_dimension_numbers<[2], [1], [1], [2], [0, 0, 0, 1, 1, 2], [0], [0]>} : vector<2x8x8xf32>, vector<2x8x8xf32>, vector<2x8x8xf32> -> vector<2x8x8xf32>
    "tpu.trace_stop"() : () -> ()
    %97 = vector.shape_cast %96 : vector<2x8x8xf32> to vector<16x8xf32>
    %c24 = arith.constant 24 : index
    %c0_46 = arith.constant 0 : index
    %98 = vector.load %arg10[%c24, %c0_46] : memref<32x32xf32, #tpu.memory_space<vmem>>, vector<8x32xf32>
    %cst_47 = arith.constant dense<0.000000e+00> : vector<16x32xf32>
    %99 = tpu.matmul %97, %98, %cst_47 {dimension_numbers = #tpu.dot_dimension_numbers<[1], [0], [0], [1], [0, 0, 1, 1], [], []>} : vector<16x8xf32>, vector<8x32xf32>, vector<16x32xf32> -> vector<16x32xf32>
    %100 = arith.addf %81, %99 : vector<16x32xf32>
    %c0_48 = arith.constant 0 : index
    %c0_49 = arith.constant 0 : index
    %101 = vector.load %arg11[%c0_48, %c0_49] : memref<1x32xf32, #tpu.memory_space<vmem>>, vector<1x32xf32>
    %102 = vector.broadcast %101 : vector<1x32xf32> to vector<16x32xf32>
    %103 = arith.addf %100, %102 : vector<16x32xf32>
    %104 = vector.shape_cast %103 : vector<16x32xf32> to vector<2x8x32xf32>
    %c0_50 = arith.constant 0 : index
    %c0_51 = arith.constant 0 : index
    %c0_52 = arith.constant 0 : index
    %105 = vector.load %arg12[%c0_50, %c0_51, %c0_52] : memref<2x8x32xf32, #tpu.memory_space<vmem>>, vector<2x8x32xf32>
    tpu.vector_store %arg12[%c0_50, %c0_51, %c0_52], %104 {strides = array<i32>} : memref<2x8x32xf32, #tpu.memory_space<vmem>>, vector<2x8x32xf32>,
    return
  }
  func.func @transform_0(%arg0: i32) -> (i32, i32, i32) {
    %c0_i32 = arith.constant 0 : i32
    %c0_i32_0 = arith.constant 0 : i32
    %c0_i32_1 = arith.constant 0 : i32
    return %arg0, %c0_i32, %c0_i32_0 : i32, i32, i32
  }
  func.func @transform_1(%arg0: i32) -> (i32, i32, i32) {
    %c0_i32 = arith.constant 0 : i32
    %c0_i32_0 = arith.constant 0 : i32
    %c0_i32_1 = arith.constant 0 : i32
    return %arg0, %c0_i32, %c0_i32_0 : i32, i32, i32
  }
  func.func @transform_2(%arg0: i32) -> (i32, i32, i32) {
    %c0_i32 = arith.constant 0 : i32
    %c0_i32_0 = arith.constant 0 : i32
    %c0_i32_1 = arith.constant 0 : i32
    return %arg0, %c0_i32, %c0_i32_0 : i32, i32, i32
  }
  func.func @transform_3(%arg0: i32) -> (i32, i32) {
    %c0_i32 = arith.constant 0 : i32
    %c0_i32_0 = arith.constant 0 : i32
    %c0_i32_1 = arith.constant 0 : i32
    return %c0_i32, %c0_i32_0 : i32, i32
  }
  func.func @transform_4(%arg0: i32) -> (i32, i32) {
    %c0_i32 = arith.constant 0 : i32
    %c0_i32_0 = arith.constant 0 : i32
    %c0_i32_1 = arith.constant 0 : i32
    return %c0_i32, %c0_i32_0 : i32, i32
  }
  func.func @transform_5(%arg0: i32) -> (i32, i32) {
    %c0_i32 = arith.constant 0 : i32
    %c0_i32_0 = arith.constant 0 : i32
    %c0_i32_1 = arith.constant 0 : i32
    return %c0_i32, %c0_i32_0 : i32, i32
  }
  func.func @transform_6(%arg0: i32) -> (i32, i32) {
    %c0_i32 = arith.constant 0 : i32
    %c0_i32_0 = arith.constant 0 : i32
    %c0_i32_1 = arith.constant 0 : i32
    return %c0_i32, %c0_i32_0 : i32, i32
  }
  func.func @transform_7(%arg0: i32) -> (i32, i32) {
    %c0_i32 = arith.constant 0 : i32
    %c0_i32_0 = arith.constant 0 : i32
    %c0_i32_1 = arith.constant 0 : i32
    return %c0_i32, %c0_i32_0 : i32, i32
  }
  func.func @transform_8(%arg0: i32) -> (i32, i32) {
    %c0_i32 = arith.constant 0 : i32
    %c0_i32_0 = arith.constant 0 : i32
    %c0_i32_1 = arith.constant 0 : i32
    return %c0_i32, %c0_i32_0 : i32, i32
  }
  func.func @transform_9(%arg0: i32) -> (i32, i32) {
    %c0_i32 = arith.constant 0 : i32
    %c0_i32_0 = arith.constant 0 : i32
    %c0_i32_1 = arith.constant 0 : i32
    return %c0_i32, %c0_i32_0 : i32, i32
  }
  func.func @transform_10(%arg0: i32) -> (i32, i32) {
    %c0_i32 = arith.constant 0 : i32
    %c0_i32_0 = arith.constant 0 : i32
    %c0_i32_1 = arith.constant 0 : i32
    return %c0_i32, %c0_i32_0 : i32, i32
  }
  func.func @transform_11(%arg0: i32) -> (i32, i32, i32) {
    %c0_i32 = arith.constant 0 : i32
    %c0_i32_0 = arith.constant 0 : i32
    %c0_i32_1 = arith.constant 0 : i32
    return %arg0, %c0_i32, %c0_i32_0 : i32, i32, i32
  }
}

</mosaic_0001>

<bundles_post_ra>
// kernel: tpu_custom_call.1
= control target key start
LH: loop header
LB: loop body
LE: loop exit
PB: predicated region body
PF: predicated region fallthrough
CT: control target
= control target key end

     0   :  { %16 = vsyncpa [#allocation3], 0  ;;  %s2852_s0 = inlined_call_operand.hbm [shape: f32[2,8,32], index: 0, kind: input, shape index: {}]   ;;  %s2853_s1 = inlined_call_operand.hbm [shape: f32[2,8,32], index: 1, kind: input, shape index: {}]   ;;  %s2854_s2 = inlined_call_operand.hbm [shape: f32[2,8,32], index: 2, kind: input, shape index: {}]   ;;  %s2855_s3 = inlined_call_operand.hbm [shape: f32[32,32], index: 3, kind: input, shape index: {}]   ;;  %s2856_s4 = inlined_call_operand.vmem [shape: f32[1,32], index: 4, kind: input, shape index: {}]   ;;  %s2857_s5 = inlined_call_operand.hbm [shape: f32[32,32], index: 5, kind: input, shape index: {}]   ;;  %s2858_s6 = inlined_call_operand.vmem [shape: f32[1,32], index: 6, kind: input, shape index: {}]   ;;  %s2859_s7 = inlined_call_operand.hbm [shape: f32[32,32], index: 7, kind: input, shape index: {}]   ;;  %s2860_s8 = inlined_call_operand.vmem [shape: f32[1,32], index: 8, kind: input, shape index: {}]   ;;  %s2861_s9 = inlined_call_operand.hbm [shape: f32[32,32], index: 9, kind: input, shape index: {}]   ;;  %s2862_s10 = inlined_call_operand.vmem [shape: f32[1,32], index: 10, kind: input, shape index: {}]   ;;  %s2863_s11 = inlined_call_operand.hbm [shape: f32[2,8,32], index: 11, kind: output, shape index: {}]  }
   0x1   :  { %17 = vsyncpa [#allocation6], 0 }
   0x2   :  { %18 = vsyncpa [#allocation9], 0 }
   0x3   :  { %19 = vsyncpa [#allocation12], 0 }
   0x4   :  { %20 = vsyncpa [#allocation4], 0  ;;  %s2547_s17 = smov [#allocation5]   ;;  %s2548_s19 = smov [#allocation8]  }
   0x5   :  { %s38_s18 = sshll.u32 %s2547_s17, 4  ;;  %s62_s20 = sshll.u32 %s2548_s19, 4  ;;  %s39_s18 = int_to_ptr.vmem [resolvable:$true] %s38_s18  ;;  %s63_s20 = int_to_ptr.vmem [resolvable:$true] %s62_s20 }
   0x6   :  { %s2385_s21 = scalar_lea.vmem %s39_s18, 256  ;;  %p2390_p1 = scmp.lt.s32.totalorder %s39_s18, %s39_s18 }
   0x7   :  { %p2386_p0 = scmp.ne.s32.totalorder %s39_s18, %s2385_s21  ;;  %p2391_p2 = scmp.lt.s32.totalorder %s2385_s21, %s2385_s21 }
   0x9   :  { %p2392_p3 = por %p2391_p2, %p2390_p1 }
   0xb   :  { %p2393_p4 = pnand %p2392_p3, %p2386_p0 }
   0xd   :  { %2396 = shalt.err (!%p2393_p4)
}
   0xe   :  { %s2549_s22 = smov 128   ;;  %s2550_s23 = smov 8  }
   0xf   :  { %44 = dma.hbm_to_vmem [thread:$0]  %s2853_s1, 256, %s39_s18, [#allocation6], %s2549_s22, %s2549_s22, %s2550_s23  }
  0x10   :  { %s2405_s26 = scalar_lea.vmem %s63_s20, 512  ;;  %p2410_p6 = scmp.lt.s32.totalorder %s63_s20, %s63_s20 }
  0x11   :  { %p2406_p5 = scmp.ne.s32.totalorder %s63_s20, %s2405_s26  ;;  %p2411_p7 = scmp.lt.s32.totalorder %s2405_s26, %s2405_s26 }
  0x13   :  { %p2412_p8 = por %p2411_p7, %p2410_p6 }
  0x15   :  { %p2413_p9 = pnand %p2412_p8, %p2406_p5 }
  0x17   :  { %2416 = shalt.err (!%p2413_p9)
}
  0x18   :  { %68 = dma.hbm_to_vmem [thread:$0]  %s2855_s3, 512, %s63_s20, [#allocation9], %s2549_s22, %s2549_s22, %s2550_s23  }
  0x19   :  { %s2551_s29 = smov [#allocation11]   ;;  %s2552_s12 = smov [#allocation2]  }
  0x1a   :  { %s90_s30 = sshll.u32 %s2551_s29, 4  ;;  %s26_s13 = sshll.u32 %s2552_s12, 4  ;;  %s91_s30 = int_to_ptr.vmem [resolvable:$true] %s90_s30  ;;  %s27_s13 = int_to_ptr.vmem [resolvable:$true] %s26_s13 }
  0x1b   :  { %s2425_s1 = scalar_lea.vmem %s91_s30, 512  ;;  %p2430_p11 = scmp.lt.s32.totalorder %s91_s30, %s91_s30 }
  0x1c   :  { %p2426_p10 = scmp.ne.s32.totalorder %s91_s30, %s2425_s1  ;;  %p2431_p12 = scmp.lt.s32.totalorder %s2425_s1, %s2425_s1 }
  0x1e   :  { %p2432_p13 = por %p2431_p12, %p2430_p11 }
  0x20   :  { %p2433_p0 = pnand %p2432_p13, %p2426_p10 }
  0x22   :  { %2436 = shalt.err (!%p2433_p0)
}
  0x23   :  { %96 = dma.hbm_to_vmem [thread:$0]  %s2859_s7, 512, %s91_s30, [#allocation12], %s2549_s22, %s2549_s22, %s2550_s23  }
  0x24   :  { %s2445_s3 = scalar_lea.vmem %s27_s13, 256  ;;  %p2450_p2 = scmp.lt.s32.totalorder %s27_s13, %s27_s13 }
  0x25   :  { %p2446_p1 = scmp.ne.s32.totalorder %s27_s13, %s2445_s3  ;;  %p2451_p3 = scmp.lt.s32.totalorder %s2445_s3, %s2445_s3 }
  0x27   :  { %p2452_p4 = por %p2451_p3, %p2450_p2 }
  0x29   :  { %p2453_p5 = pnand %p2452_p4, %p2446_p1 }
  0x2b   :  { %2456 = shalt.err (!%p2453_p5)
}
  0x2c   :  { %32 = dma.hbm_to_vmem [thread:$0]  %s2852_s0, 256, %s27_s13, [#allocation3], %s2549_s22, %s2549_s22, %s2550_s23  }
  0x2d   :  { %s2553_s18 = smov [#allocation7]   ;;  %s2554_s20 = smov [#allocation10]  }
  0x2e   :  { %s50_s19 = sshll.u32 %s2553_s18, 4  ;;  %s76_s21 = sshll.u32 %s2554_s20, 4  ;;  %s51_s19 = int_to_ptr.vmem [resolvable:$true] %s50_s19  ;;  %s77_s21 = int_to_ptr.vmem [resolvable:$true] %s76_s21 }
  0x2f   :  { %s2465_s7 = scalar_lea.vmem %s51_s19, 256  ;;  %p2470_p7 = scmp.lt.s32.totalorder %s51_s19, %s51_s19 }
  0x30   :  { %p2466_p6 = scmp.ne.s32.totalorder %s51_s19, %s2465_s7  ;;  %p2471_p8 = scmp.lt.s32.totalorder %s2465_s7, %s2465_s7 }
  0x32   :  { %p2472_p9 = por %p2471_p8, %p2470_p7 }
  0x34   :  { %p2473_p10 = pnand %p2472_p9, %p2466_p6 }
  0x36   :  { %2476 = shalt.err (!%p2473_p10)
}
  0x37   :  { %56 = dma.hbm_to_vmem [thread:$0]  %s2854_s2, 256, %s51_s19, [#allocation6], %s2549_s22, %s2549_s22, %s2550_s23  }
  0x38   :  { %s2485_s0 = scalar_lea.vmem %s77_s21, 512  ;;  %p2490_p12 = scmp.lt.s32.totalorder %s77_s21, %s77_s21 }
  0x39   :  { %p2486_p11 = scmp.ne.s32.totalorder %s77_s21, %s2485_s0  ;;  %p2491_p13 = scmp.lt.s32.totalorder %s2485_s0, %s2485_s0 }
  0x3b   :  { %p2492_p0 = por %p2491_p13, %p2490_p12 }
  0x3d   :  { %p2493_p1 = pnand %p2492_p0, %p2486_p11 }
  0x3f   :  { %2496 = shalt.err (!%p2493_p1)
}
  0x40   :  { %82 = dma.hbm_to_vmem [thread:$0]  %s2857_s5, 512, %s77_s21, [#allocation9], %s2549_s22, %s2549_s22, %s2550_s23  }
  0x41   :  { %s2555_s28 = smov [#allocation13]  }
  0x42   :  { %s104_s29 = sshll.u32 %s2555_s28, 4  ;;  %s105_s29 = int_to_ptr.vmem [resolvable:$true] %s104_s29 }
  0x43   :  { %s2505_s30 = scalar_lea.vmem %s105_s29, 512  ;;  %p2510_p3 = scmp.lt.s32.totalorder %s105_s29, %s105_s29 }
  0x44   :  { %p2506_p2 = scmp.ne.s32.totalorder %s105_s29, %s2505_s30  ;;  %p2511_p4 = scmp.lt.s32.totalorder %s2505_s30, %s2505_s30 }
  0x46   :  { %p2512_p5 = por %p2511_p4, %p2510_p3 }
  0x48   :  { %p2513_p6 = pnand %p2512_p5, %p2506_p2 }
  0x4a   :  { %2516 = shalt.err (!%p2513_p6)
}
  0x4b   :  { %110 = dma.hbm_to_vmem [thread:$0]  %s2861_s9, 512, %s105_s29, [#allocation12], %s2549_s22, %s2549_s22, %s2550_s23  }
  0x4c   :  { %2537 = dma.done.wait [#allocation3], 256  }
  0x4d   :  { %2538 = vsyncadd [#allocation3], 4294967040 }
  0x4e   :  { %2539 = dma.done.wait [#allocation6], 512  }
  0x4f   :  { %2540 = vsyncadd [#allocation6], 4294966784 }
  0x50   :  { %2541 = dma.done.wait [#allocation9], 1024  }
  0x51   :  { %2542 = vsyncadd [#allocation9], 4294966272 }
  0x52   :  { %2543 = dma.done.wait [#allocation12], 1024  }
  0x53   :  { %2544 = vsyncadd [#allocation12], 4294966272  ;;  %v236_v0 = vld [vmem:[#allocation10 + $0x18] sm:$0xff]  ;;  %v235_v2 = vld [vmem:[#allocation10 + $0x10] sm:$0xff]  ;;  %vm151_vm0 = vcmask 261120   ;;  %v2556_v12 = vmov 0.0  }
  0x54   :  { %v143_v1 = vld [vmem:[#allocation8 + $0x18] sm:$0xff]  ;;  %2208 = vmatprep.subr.mxu1 %v236_v0  ;;  %v142_v3 = vld [vmem:[#allocation8 + $0x10] sm:$0xff]  ;;  %v234_v4 = vld [vmem:[#allocation10 + $0x8] sm:$0xff]  ;;  %vm2557_vm1 = vmmov 0   ;;  %vm417_vm2 = vcmask 64512   ;;  %s2558_s14 = smov 120  }
  0x55   :  { %2197 = vmatprep.subr.mxu0 %v143_v1  ;;  %2209 = vmatpush3.msra.mxu1 %v236_v0  ;;  %v141_v5 = vld [vmem:[#allocation8 + $0x8] sm:$0xff]  ;;  %v233_v6 = vld [vmem:[#allocation10] sm:$0xff]  ;;  %v134_v10 = vld [vmem:[#allocation2] sm:$0xff]  ;;  %s2560_s15 = smov 104   ;;  %s2561_s17 = smov [#allocation14]  }
  0x56   :  { %2198 = vmatpush3.msra.mxu0 %v143_v1  ;;  %2210 = vmatprep.subr.mxu1 %v235_v2  ;;  %v136_v7 = vld [vmem:[#allocation5] sm:$0xff]  ;;  %v137_v9 = vld [vmem:[#allocation5 + $0x8] sm:$0xff]  ;;  %v135_v11 = vld [vmem:[#allocation2 + $0x8] sm:$0xff]  ;;  %s2078_s18 = sshll.u32 %s2561_s17, 4  ;;  %s2079_s18 = int_to_ptr.vmem [resolvable:$true] %s2078_s18 }
  0x57   :  { %2199 = vmatprep.subr.mxu0 %v142_v3  ;;  %2211 = vmatpush3.msra.mxu1 %v235_v2  ;;  %v140_v8 = vld [vmem:[#allocation8] sm:$0xff]  ;;  %v2096_v13 = vld [vmem:[%s2858_s6] ss:$0 sm:$0xff]  ;;  %v328_v23 = vld [vmem:[#allocation11 + $0x18] sm:$0xff]  ;;  %s2517_s19 = scalar_lea.vmem %s2079_s18, 256  ;;  %p2522_p8 = scmp.lt.s32.totalorder %s2079_s18, %s2079_s18 }
  0x58   :  { %2200 = vmatpush3.msra.mxu0 %v142_v3  ;;  %2212 = vmatprep.subr.mxu1 %v234_v4  ;;  %v2093_v17 = vld [vmem:[%s2856_s4] ss:$0 sm:$0xff]  ;;  %v326_v26 = vld [vmem:[#allocation11 + $0x8] sm:$0xff]  ;;  %v325_v27 = vld [vmem:[#allocation11] sm:$0xff]  ;;  %p2518_p7 = scmp.ne.s32.totalorder %s2079_s18, %s2517_s19  ;;  %p2523_p9 = scmp.lt.s32.totalorder %s2517_s19, %s2517_s19 }
  0x59   :  { %2201 = vmatprep.subr.mxu0 %v141_v5  ;;  %2213 = vmatpush3.msra.mxu1 %v234_v4  ;;  %v327_v24 = vld [vmem:[#allocation11 + $0x10] sm:$0xff]  ;;  %v139_v28 = vld [vmem:[#allocation7 + $0x8] sm:$0xff] }
  0x5a   :  { %2202 = vmatpush3.msra.mxu0 %v141_v5  ;;  %2214 = vmatprep.subr.mxu1 %v233_v6  ;;  %v138_v25 = vld [vmem:[#allocation7] sm:$0xff]  ;;  %p2524_p10 = por %p2523_p9, %p2522_p8 }
  0x5b   :  { %2216 = vmatprep.mubr.msk.f32.mxu1 %vm151_vm0, %v136_v7  ;;  %2215 = vmatpush3.msra.mxu1 %v233_v6  ;;  %v2099_v46 = vld [vmem:[%s2860_s8] ss:$0 sm:$0xff]  ;;  %s2559_s8 = smov 112  }
  0x5c   :  { %2203 = vmatprep.subr.mxu0 %v140_v8  ;;  %2217 = vmatmul.mubr.msk.f32.vlgmr.msra.gmra.mxu1 %vm151_vm0, %v137_v9  ;;  %p2525_p11 = pnand %p2524_p10, %p2518_p7 }
  0x5d   :  { %2204 = vmatpush3.msra.mxu0 %v140_v8  ;;  %2205 = vmatprep.mubr.msk.f32.mxu0 %vm151_vm0, %v134_v10 }
  0x5e   :  { %2206 = vmatmul.mubr.msk.f32.vlgmr.msra.gmra.mxu0 %vm151_vm0, %v135_v11  ;;  %2230 = vmatprep.subr.mxu1 %v2556_v12 }
  0x5f   :  { %2232 = vmatprep.mubr.msk.f32.mxu1 %vm2557_vm1, %v2556_v12  ;;  %2219 = vmatprep.subr.mxu0 %v328_v23 }
  0x60   :  { %2220 = vmatpush3.msra.mxu0 %v328_v23  ;;  %2227 = vmatprep.mubr.msk.f32.mxu0 %vm151_vm0, %v138_v25 }
  0x61   :  { %2221 = vmatprep.subr.mxu0 %v327_v24 }
  0x62   :  { %2222 = vmatpush3.msra.mxu0 %v327_v24 }
  0x63   :  { %2223 = vmatprep.subr.mxu0 %v326_v26 }
  0x64   :  { %2224 = vmatpush3.msra.mxu0 %v326_v26 }
  0x65   :  { %2225 = vmatprep.subr.mxu0 %v325_v27 }
  0x66   :  { %2226 = vmatpush3.msra.mxu0 %v325_v27 }
  0x67   :  { %2228 = vmatmul.mubr.msk.f32.vlgmr.msra.gmra.mxu0 %vm151_vm0, %v139_v28  ;;  %2240 = vmatprep.subr.mxu0 %v2556_v12 }
  0x68   :  { %2242 = vmatprep.mubr.msk.f32.mxu0 %vm2557_vm1, %v2556_v12 }
 0x11c   :  { %v2218_v14 = vpop.f32.mrf.mxu1 }
 0x11d   :  { %v2674_v15 = vadd.f32 %v2218_v14, %v2096_v13 }
 0x11e   :  { %v2207_v16 = vpop.f32.mrf.mxu0  ;;  %v316_v18 = vpop.f32.mrf.mxu1 }
 0x11f   :  { %v2679_v19 = vadd.f32 %v2096_v13, %v316_v18  ;;  %819 = vrot.lane.b32.xlu1 %v2674_v15, %s2558_s14  ;;  %v2696_v22 = vadd.f32 %v2207_v16, %v2093_v17 }
 0x120   :  { %v224_v20 = vpop.f32.mrf.mxu0 }
 0x121   :  { %v2683_v21 = vadd.f32 %v2093_v17, %v224_v20  ;;  %2231 = vmatpush3.xpose.msk.msra.mxu1 %vm417_vm2, %v2679_v19  ;;  %v738_v20 = vld [vmem:[#allocation13] sm:$0xff] }
 0x122   :  { %2235 = vmatprep.subr.mxu1 %v2556_v12 }
 0x123   :  { %739 = vrot.lane.b32.xlu1 %v2683_v21, %s2558_s14 }
 0x124   :  { %2233 = vmatmul.mubr.msk.f32.vlgmr.msra.gmra.mxu1 %vm417_vm2, %v2683_v21 }
 0x125   :  { %2236 = vmatpush3.xpose.msk.msra.mxu1 %vm417_vm2, %v2674_v15  ;;  %2237 = vmatprep.mubr.msk.f32.mxu1 %vm2557_vm1, %v2556_v12 }
 0x126   :  { %2245 = vmatprep.subr.mxu1 %v2556_v12 }
 0x127   :  { %v2229_v45 = vpop.f32.mrf.mxu0 }
 0x128   :  { %2238 = vmatmul.mubr.msk.f32.vlgmr.msra.gmra.mxu1 %vm417_vm2, %v2696_v22  ;;  %v2717_v47 = vadd.f32 %v2229_v45, %v2099_v46 }
 0x129   :  { %2247 = vmatprep.mubr.msk.f32.mxu1 %vm2557_vm1, %v2556_v12  ;;  %v408_v48 = vpop.f32.mrf.mxu0 }
 0x12a   :  { %2246 = vmatpush3.msra.mxu1 %v2717_v47  ;;  %v2720_v49 = vadd.f32 %v2099_v46, %v408_v48 }
 0x12b   :  { %2255 = vmatprep.subr.mxu1 %v2556_v12 }
 0x12c   :  { %2241 = vmatpush3.msra.mxu0 %v2720_v49 }
 0x12d   :  { %2250 = vmatprep.subr.mxu0 %v2556_v12 }
 0x191   :  { %v820_v50 = vpop.permute.xlu1 %819 }
 0x195   :  { %v740_v51 = vpop.permute.xlu1 %739 }
 0x1e4   :  { %v490_v29 = vpop.f32.mrf.mxu1 }
 0x1e5   :  { %v570_v30 = vsel %vm417_vm2, %v490_v29, -inf }
 0x1e6   :  { %571 = vmax.xlane.f32.xlu0 %v570_v30  ;;  %v2234_v31 = vpop.f32.mrf.mxu1 }
 0x1e8   :  { %v566_v32 = vpop.f32.mrf.mxu1 }
 0x1e9   :  { %v573_v33 = vsel %vm417_vm2, %v566_v32, -inf }
 0x1ea   :  { %574 = vmax.xlane.f32.xlu0 %v573_v33  ;;  %v2239_v34 = vpop.f32.mrf.mxu1  ;;  %v1071_v33 = vld [vmem:[#allocation13 + $0x8] sm:$0xff] }
 0x200   :  { %741 = vrot.lane.b32.xlu0 %v2679_v19, %s2558_s14 }
 0x26f   :  { %v572_v35 = vpop.xlane.xlu0 %571 }
 0x270   :  { %v576_v36 = vsub.f32 %v490_v29, %v572_v35 }
 0x272   :  { %v578_v37 = vmul.f32 1.442695, %v576_v36 }
 0x273   :  { %v575_v38 = vpop.xlane.xlu0 %574 }
 0x274   :  { %2345 = vpow2.f32 %v578_v37  ;;  %v577_v39 = vsub.f32 %v566_v32, %v575_v38 }
 0x276   :  { %v580_v40 = vmul.f32 1.442695, %v577_v39 }
 0x277   :  { %v742_v56 = vpop.permute.xlu0 %741 }
 0x278   :  { %2347 = vpow2.f32 %v580_v40 }
 0x281   :  { %v2346_v41 = vpop.eup %2345 }
 0x282   :  { %v582_v42 = vsel %vm417_vm2, %v2346_v41, 0.0 }
 0x283   :  { %583 = vadd.xlane.f32.xlu1 %v582_v42 }
 0x285   :  { %v2348_v43 = vpop.eup %2347 }
 0x286   :  { %v585_v44 = vsel %vm417_vm2, %v2348_v43, 0.0 }
 0x287   :  { %586 = vadd.xlane.f32.xlu1 %v585_v44 }
 0x298   :  { %817 = vrot.lane.b32.xlu1 %v2696_v22, %s2558_s14 }
 0x30c   :  { %v584_v52 = vpop.xlane.xlu1 %583 }
 0x30d   :  { %2349 = vrcp.f32 %v584_v52 }
 0x310   :  { %v587_v53 = vpop.xlane.xlu1 %586 }
 0x311   :  { %2351 = vrcp.f32 %v587_v53 }
 0x314   :  { %v818_v59 = vpop.permute.xlu1 %817 }
 0x31a   :  { %v2350_v54 = vpop.eup %2349 }
 0x31b   :  { %v590_v55 = vmul.f32 %v2350_v54, %v2346_v41 }
 0x31d   :  { %2243 = vmatmul.mubr.msk.f32.vlgmr.msra.gmra.mxu0 %vm417_vm2, %v590_v55 }
 0x31e   :  { %v2352_v57 = vpop.eup %2351  ;;  %2251 = vmatpush3.xpose.msk.msra.mxu0 %vm417_vm2, %v742_v56  ;;  %2252 = vmatprep.mubr.msk.f32.mxu0 %vm2557_vm1, %v2556_v12 }
 0x31f   :  { %v591_v58 = vmul.f32 %v2352_v57, %v2348_v43  ;;  %2260 = vmatprep.subr.mxu0 %v2556_v12 }
 0x321   :  { %2248 = vmatmul.mubr.msk.f32.vlgmr.msra.gmra.mxu1 %vm417_vm2, %v591_v58  ;;  %2253 = vmatmul.mubr.msk.f32.vlgmr.msra.gmra.mxu0 %vm417_vm2, %v740_v51 }
 0x322   :  { %2256 = vmatpush3.xpose.msk.msra.mxu1 %vm417_vm2, %v820_v50  ;;  %2257 = vmatprep.mubr.msk.f32.mxu1 %vm2557_vm1, %v2556_v12 }
 0x323   :  { %2265 = vmatprep.subr.mxu1 %v2556_v12  ;;  %2262 = vmatprep.mubr.msk.f32.mxu0 %vm2557_vm1, %v2556_v12 }
 0x325   :  { %2258 = vmatmul.mubr.msk.f32.vlgmr.msra.gmra.mxu1 %vm417_vm2, %v818_v59 }
 0x326   :  { %2267 = vmatprep.mubr.msk.f32.mxu1 %vm2557_vm1, %v2556_v12 }
 0x3dd   :  { %v661_v60 = vpop.f32.mrf.mxu0 }
 0x3df   :  { %v2244_v61 = vpop.f32.mrf.mxu0 }
 0x3e1   :  { %v734_v62 = vpop.f32.mrf.mxu1  ;;  %v813_v63 = vpop.f32.mrf.mxu0 }
 0x3e2   :  { %v895_v0 = vsel %vm417_vm2, %v813_v63, -inf }
 0x3e3   :  { %896 = vmax.xlane.f32.xlu0 %v895_v0  ;;  %v2249_v1 = vpop.f32.mrf.mxu1  ;;  %v2254_v2 = vpop.f32.mrf.mxu0 }
 0x3e5   :  { %v891_v3 = vpop.f32.mrf.mxu1 }
 0x3e6   :  { %v898_v4 = vsel %vm417_vm2, %v891_v3, -inf }
 0x3e7   :  { %899 = vmax.xlane.f32.xlu1 %v898_v4  ;;  %v2259_v5 = vpop.f32.mrf.mxu1 }
 0x3f8   :  { %995 = vrot.lane.b32.xlu1 %v2717_v47, %s2558_s14 }
 0x3fc   :  { %1236 = vrot.lane.b32.xlu1 %v2679_v19, %s2559_s8 }
 0x400   :  { %1314 = vrot.lane.b32.xlu1 %v2674_v15, %s2559_s8 }
 0x404   :  { %1312 = vrot.lane.b32.xlu1 %v2696_v22, %s2559_s8 }
 0x46c   :  { %v897_v6 = vpop.xlane.xlu0 %896 }
 0x46d   :  { %v901_v7 = vsub.f32 %v813_v63, %v897_v6  ;;  %v1564_v6 = vld [vmem:[#allocation13 + $0x10] sm:$0xff] }
 0x46f   :  { %v903_v8 = vmul.f32 1.442695, %v901_v7 }
 0x470   :  { %v900_v9 = vpop.xlane.xlu1 %899 }
 0x471   :  { %2353 = vpow2.f32 %v903_v8  ;;  %v902_v10 = vsub.f32 %v891_v3, %v900_v9 }
 0x473   :  { %v905_v11 = vmul.f32 1.442695, %v902_v10 }
 0x474   :  { %v996_v13 = vpop.permute.xlu1 %995 }
 0x475   :  { %2355 = vpow2.f32 %v905_v11  ;;  %2266 = vmatpush3.msra.mxu1 %v996_v13 }
 0x476   :  { %2275 = vmatprep.subr.mxu1 %v738_v20 }
 0x478   :  { %v1237_v28 = vpop.permute.xlu1 %1236 }
 0x47c   :  { %v1315_v31 = vpop.permute.xlu1 %1314 }
 0x47e   :  { %v2354_v14 = vpop.eup %2353 }
 0x47f   :  { %v907_v16 = vsel %vm417_vm2, %v2354_v14, 0.0 }
 0x480   :  { %908 = vadd.xlane.f32.xlu0 %v907_v16  ;;  %v1313_v32 = vpop.permute.xlu1 %1312 }
 0x482   :  { %v2356_v17 = vpop.eup %2355 }
 0x483   :  { %v910_v18 = vsel %vm417_vm2, %v2356_v17, 0.0 }
 0x484   :  { %911 = vadd.xlane.f32.xlu0 %v910_v18 }
 0x49a   :  { %918 = vrot.lane.b32.xlu0 %v2720_v49, %s2558_s14 }
 0x49e   :  { %1234 = vrot.lane.b32.xlu0 %v2683_v21, %s2559_s8 }
 0x509   :  { %v909_v23 = vpop.xlane.xlu0 %908 }
 0x50a   :  { %2357 = vrcp.f32 %v909_v23 }
 0x50d   :  { %v912_v24 = vpop.xlane.xlu0 %911 }
 0x50e   :  { %2359 = vrcp.f32 %v912_v24 }
 0x511   :  { %v919_v25 = vpop.permute.xlu0 %918 }
 0x512   :  { %2261 = vmatpush3.msra.mxu0 %v919_v25 }
 0x513   :  { %2270 = vmatprep.subr.mxu0 %v1071_v33 }
 0x515   :  { %v1235_v38 = vpop.permute.xlu0 %1234 }
 0x517   :  { %v2358_v26 = vpop.eup %2357 }
 0x518   :  { %v915_v27 = vmul.f32 %v2358_v26, %v2354_v14 }
 0x51a   :  { %2263 = vmatmul.mubr.msk.f32.vlgmr.msra.gmra.mxu0 %vm417_vm2, %v915_v27 }
 0x51b   :  { %v2360_v29 = vpop.eup %2359  ;;  %2271 = vmatpush3.msra.mxu0 %v1071_v33 }
 0x51c   :  { %v916_v30 = vmul.f32 %v2360_v29, %v2356_v17  ;;  %2280 = vmatprep.subr.mxu0 %v2556_v12 }
 0x51e   :  { %2268 = vmatmul.mubr.msk.f32.vlgmr.msra.gmra.mxu1 %vm417_vm2, %v916_v30 }
 0x51f   :  { %2277 = vmatprep.mubr.msk.f32.mxu1 %vm417_vm2, %v661_v60  ;;  %2276 = vmatpush3.msra.mxu1 %v738_v20 }
 0x520   :  { %2285 = vmatprep.subr.mxu1 %v2556_v12 }
 0x522   :  { %2278 = vmatmul.mubr.msk.f32.vlgmr.msra.gmra.mxu1 %vm417_vm2, %v734_v62 }
 0x523   :  { %2286 = vmatpush3.xpose.msk.msra.mxu1 %vm417_vm2, %v1315_v31  ;;  %2287 = vmatprep.mubr.msk.f32.mxu1 %vm2557_vm1, %v2556_v12 }
 0x524   :  { %2295 = vmatprep.subr.mxu1 %v2556_v12 }
 0x526   :  { %2288 = vmatmul.mubr.msk.f32.vlgmr.msra.gmra.mxu1 %vm417_vm2, %v1313_v32 }
 0x527   :  { %2297 = vmatprep.mubr.msk.f32.mxu1 %vm2557_vm1, %v2556_v12 }
 0x5da   :  { %v990_v34 = vpop.f32.mrf.mxu0 }
 0x5db   :  { %2272 = vmatprep.mubr.msk.f32.mxu0 %vm417_vm2, %v990_v34 }
 0x5dc   :  { %v2264_v35 = vpop.f32.mrf.mxu0 }
 0x5de   :  { %v1067_v36 = vpop.f32.mrf.mxu1 }
 0x5df   :  { %2273 = vmatmul.mubr.msk.f32.vlgmr.msra.gmra.mxu0 %vm417_vm2, %v1067_v36 }
 0x5e0   :  { %2281 = vmatpush3.xpose.msk.msra.mxu0 %vm417_vm2, %v1237_v28  ;;  %v2269_v37 = vpop.f32.mrf.mxu1  ;;  %2282 = vmatprep.mubr.msk.f32.mxu0 %vm2557_vm1, %v2556_v12 }
 0x5e1   :  { %2290 = vmatprep.subr.mxu0 %v2556_v12 }
 0x5e2   :  { %v2778_v39 = vpop.f32.mrf.mxu1 }
 0x5e3   :  { %2283 = vmatmul.mubr.msk.f32.vlgmr.msra.gmra.mxu0 %vm417_vm2, %v1235_v38 }
 0x5e4   :  { %v2781_v40 = vpop.f32.mrf.mxu1  ;;  %2292 = vmatprep.mubr.msk.f32.mxu0 %vm2557_vm1, %v2556_v12 }
 0x5e6   :  { %v1386_v41 = vpop.f32.mrf.mxu1 }
 0x5e7   :  { %v1393_v42 = vsel %vm417_vm2, %v1386_v41, -inf }
 0x5e8   :  { %1394 = vmax.xlane.f32.xlu1 %v1393_v42  ;;  %v2289_v43 = vpop.f32.mrf.mxu1 }
 0x5e9   :  { %v1978_v43 = vld [vmem:[#allocation13 + $0x18] sm:$0xff] }
 0x5f9   :  { %1488 = vrot.lane.b32.xlu1 %v2717_v47, %s2559_s8 }
 0x5fd   :  { %1650 = vrot.lane.b32.xlu1 %v2679_v19, %s2560_s15 }
 0x601   :  { %1728 = vrot.lane.b32.xlu1 %v2674_v15, %s2560_s15 }
 0x605   :  { %1726 = vrot.lane.b32.xlu1 %v2696_v22, %s2560_s15 }
 0x671   :  { %v1395_v44 = vpop.xlane.xlu1 %1394 }
 0x672   :  { %v1397_v46 = vsub.f32 %v1386_v41, %v1395_v44 }
 0x674   :  { %v1400_v48 = vmul.f32 1.442695, %v1397_v46 }
 0x675   :  { %v1489_v45 = vpop.permute.xlu1 %1488 }
 0x676   :  { %2296 = vmatpush3.msra.mxu1 %v1489_v45  ;;  %2361 = vpow2.f32 %v1400_v48 }
 0x677   :  { %2305 = vmatprep.subr.mxu1 %v2556_v12 }
 0x679   :  { %v1651_v62 = vpop.permute.xlu1 %1650 }
 0x67d   :  { %v1729_v9 = vpop.permute.xlu1 %1728 }
 0x681   :  { %v1727_v13 = vpop.permute.xlu1 %1726 }
 0x683   :  { %v2362_v53 = vpop.eup %2361 }
 0x684   :  { %v1405_v22 = vsel %vm417_vm2, %v2362_v53, 0.0 }
 0x69f   :  { %v2795_v50 = vpop.f32.mrf.mxu0 }
 0x6a0   :  { %v1231_v23 = vadd.f32 %v2778_v39, %v2795_v50  ;;  %v2134_v50 = vld [vmem:[%s2862_s10] ss:$0 sm:$0xff] }
 0x6a1   :  { %v2797_v51 = vpop.f32.mrf.mxu0 }
 0x6a2   :  { %v1226_v25 = vadd.f32 %v2781_v40, %v2797_v51 }
 0x6a3   :  { %v1308_v52 = vpop.f32.mrf.mxu0 }
 0x6a4   :  { %v1390_v19 = vsel %vm417_vm2, %v1308_v52, -inf }
 0x6a5   :  { %1391 = vmax.xlane.f32.xlu0 %v1390_v19  ;;  %v2284_v15 = vpop.f32.mrf.mxu0 }
 0x6a9   :  { %1406 = vadd.xlane.f32.xlu0 %v1405_v22 }
 0x72e   :  { %v1392_v54 = vpop.xlane.xlu0 %1391 }
 0x72f   :  { %v1396_v55 = vsub.f32 %v1308_v52, %v1392_v54 }
 0x731   :  { %v1398_v56 = vmul.f32 1.442695, %v1396_v55 }
 0x732   :  { %v1407_v57 = vpop.xlane.xlu0 %1406 }
 0x733   :  { %2363 = vpow2.f32 %v1398_v56 }
 0x734   :  { %2365 = vrcp.f32 %v1407_v57 }
 0x740   :  { %v2364_v58 = vpop.eup %2363 }
 0x741   :  { %v2366_v59 = vpop.eup %2365  ;;  %v1402_v60 = vsel %vm417_vm2, %v2364_v58, 0.0 }
 0x742   :  { %1403 = vadd.xlane.f32.xlu0 %v1402_v60  ;;  %v1411_v61 = vmul.f32 %v2366_v59, %v2362_v53 }
 0x744   :  { %2298 = vmatmul.mubr.msk.f32.vlgmr.msra.gmra.mxu1 %vm417_vm2, %v1411_v61 }
 0x745   :  { %2306 = vmatpush3.xpose.msk.msra.mxu1 %vm417_vm2, %v1651_v62  ;;  %2307 = vmatprep.mubr.msk.f32.mxu1 %vm2557_vm1, %v2556_v12 }
 0x746   :  { %2315 = vmatprep.subr.mxu1 %v2556_v12 }
 0x758   :  { %1412 = vrot.lane.b32.xlu0 %v2720_v49, %s2559_s8 }
 0x75c   :  { %1648 = vrot.lane.b32.xlu0 %v2683_v21, %s2560_s15 }
 0x7cb   :  { %v1404_v63 = vpop.xlane.xlu0 %1403 }
 0x7cc   :  { %2367 = vrcp.f32 %v1404_v63 }
 0x7cf   :  { %v1413_v0 = vpop.permute.xlu0 %1412 }
 0x7d0   :  { %2291 = vmatpush3.msra.mxu0 %v1413_v0 }
 0x7d1   :  { %2300 = vmatprep.subr.mxu0 %v1564_v6 }
 0x7d3   :  { %v1649_v1 = vpop.permute.xlu0 %1648 }
 0x7d4   :  { %2308 = vmatmul.mubr.msk.f32.vlgmr.msra.gmra.mxu1 %vm417_vm2, %v1649_v1 }
 0x7d5   :  { %2317 = vmatprep.mubr.msk.f32.mxu1 %vm2557_vm1, %v2556_v12 }
 0x7d9   :  { %v2368_v2 = vpop.eup %2367 }
 0x7da   :  { %v1410_v3 = vmul.f32 %v2368_v2, %v2364_v58 }
 0x7dc   :  { %2293 = vmatmul.mubr.msk.f32.vlgmr.msra.gmra.mxu0 %vm417_vm2, %v1410_v3 }
 0x7dd   :  { %2301 = vmatpush3.msra.mxu0 %v1564_v6 }
 0x7de   :  { %2310 = vmatprep.subr.mxu0 %v2556_v12 }
 0x804   :  { %v1560_v4 = vpop.f32.mrf.mxu1 }
 0x806   :  { %v2299_v5 = vpop.f32.mrf.mxu1 }
 0x894   :  { %v1722_v21 = vpop.f32.mrf.mxu1 }
 0x895   :  { %v1804_v7 = vsel %vm417_vm2, %v1722_v21, -inf }
 0x896   :  { %1805 = vmax.xlane.f32.xlu0 %v1804_v7  ;;  %v2309_v8 = vpop.f32.mrf.mxu1 }
 0x89c   :  { %v1484_v10 = vpop.f32.mrf.mxu0 }
 0x89d   :  { %2302 = vmatprep.mubr.msk.f32.mxu0 %vm417_vm2, %v1484_v10 }
 0x89e   :  { %v2294_v11 = vpop.f32.mrf.mxu0  ;;  %2303 = vmatmul.mubr.msk.f32.vlgmr.msra.gmra.mxu0 %vm417_vm2, %v1560_v4 }
 0x89f   :  { %2311 = vmatpush3.xpose.msk.msra.mxu0 %vm417_vm2, %v1729_v9  ;;  %2312 = vmatprep.mubr.msk.f32.mxu0 %vm2557_vm1, %v2556_v12 }
 0x8a0   :  { %2320 = vmatprep.subr.mxu0 %v2556_v12 }
 0x8a2   :  { %2313 = vmatmul.mubr.msk.f32.vlgmr.msra.gmra.mxu0 %vm417_vm2, %v1727_v13 }
 0x8a3   :  { %2322 = vmatprep.mubr.msk.f32.mxu0 %vm2557_vm1, %v2556_v12 }
 0x91f   :  { %v1806_v14 = vpop.xlane.xlu0 %1805 }
 0x920   :  { %v1810_v16 = vsub.f32 %v1722_v21, %v1806_v14 }
 0x922   :  { %v1812_v17 = vmul.f32 1.442695, %v1810_v16 }
 0x924   :  { %2369 = vpow2.f32 %v1812_v17 }
 0x931   :  { %v2370_v18 = vpop.eup %2369 }
 0x932   :  { %v1816_v20 = vsel %vm417_vm2, %v2370_v18, 0.0 }
 0x933   :  { %1817 = vadd.xlane.f32.xlu0 %v1816_v20 }
 0x95e   :  { %v2304_v24 = vpop.f32.mrf.mxu0 }
 0x95f   :  { %v1647_v26 = vadd.f32 %v2304_v24, %v1231_v23 }
 0x960   :  { %v1637_v27 = vpop.f32.mrf.mxu0 }
 0x961   :  { %v1646_v28 = vadd.f32 %v1637_v27, %v1226_v25 }
 0x962   :  { %v1800_v29 = vpop.f32.mrf.mxu0 }
 0x963   :  { %v1807_v12 = vsel %vm417_vm2, %v1800_v29, -inf }
 0x964   :  { %1808 = vmax.xlane.f32.xlu1 %v1807_v12  ;;  %v2314_v30 = vpop.f32.mrf.mxu0 }
 0x975   :  { %1902 = vrot.lane.b32.xlu1 %v2717_v47, %s2560_s15 }
 0x9bc   :  { %v1818_v37 = vpop.xlane.xlu0 %1817 }
 0x9ed   :  { %v1809_v31 = vpop.xlane.xlu1 %1808 }
 0x9ee   :  { %v1811_v32 = vsub.f32 %v1800_v29, %v1809_v31 }
 0x9f0   :  { %v1814_v33 = vmul.f32 1.442695, %v1811_v32 }
 0x9f1   :  { %v1903_v34 = vpop.permute.xlu1 %1902 }
 0x9f2   :  { %2371 = vpow2.f32 %v1814_v33  ;;  %2321 = vmatpush3.msra.mxu0 %v1903_v34 }
 0x9f3   :  { %2373 = vrcp.f32 %v1818_v37 }
 0x9ff   :  { %v2372_v35 = vpop.eup %2371 }
 0xa00   :  { %v1819_v36 = vsel %vm417_vm2, %v2372_v35, 0.0  ;;  %v2374_v39 = vpop.eup %2373 }
 0xa01   :  { %1820 = vadd.xlane.f32.xlu0 %v1819_v36  ;;  %v1824_v47 = vmul.f32 %v2374_v39, %v2370_v18 }
 0xa17   :  { %1826 = vrot.lane.b32.xlu0 %v2720_v49, %s2560_s15 }
 0xa8a   :  { %v1821_v38 = vpop.xlane.xlu0 %1820 }
 0xa8b   :  { %2375 = vrcp.f32 %v1821_v38 }
 0xa8e   :  { %v1827_v40 = vpop.permute.xlu0 %1826 }
 0xa8f   :  { %2316 = vmatpush3.msra.mxu1 %v1827_v40 }
 0xa90   :  { %2318 = vmatmul.mubr.msk.f32.vlgmr.msra.gmra.mxu1 %vm417_vm2, %v1824_v47  ;;  %2325 = vmatprep.subr.mxu1 %v1978_v43 }
 0xa91   :  { %2326 = vmatpush3.msra.mxu1 %v1978_v43 }
 0xa98   :  { %v2376_v41 = vpop.eup %2375 }
 0xa99   :  { %v1825_v42 = vmul.f32 %v2376_v41, %v2372_v35 }
 0xa9b   :  { %2323 = vmatmul.mubr.msk.f32.vlgmr.msra.gmra.mxu0 %vm417_vm2, %v1825_v42 }
 0xb50   :  { %v1898_v44 = vpop.f32.mrf.mxu1 }
 0xb51   :  { %2327 = vmatprep.mubr.msk.f32.mxu1 %vm417_vm2, %v1898_v44 }
 0xb52   :  { %v2319_v49 = vpop.f32.mrf.mxu1 }
 0xb5b   :  { %v1974_v45 = vpop.f32.mrf.mxu0 }
 0xb5c   :  { %2328 = vmatmul.mubr.msk.f32.vlgmr.msra.gmra.mxu1 %vm417_vm2, %v1974_v45 }
 0xb5d   :  { %v2324_v46 = vpop.f32.mrf.mxu0 }
 0xc1c   :  { %v2329_v48 = vpop.f32.mrf.mxu1 }
 0xc1d   :  { %v2061_v51 = vadd.f32 %v2329_v48, %v1647_v26 }
 0xc1e   :  { %v2051_v52 = vpop.f32.mrf.mxu1 }
 0xc1f   :  { %v2070_v19 = vadd.f32 %v2134_v50, %v2061_v51  ;;  %v2060_v53 = vadd.f32 %v2051_v52, %v1646_v28 }
 0xc21   :  { %2072 = vst.msk [vmem:[#allocation14 + $0x8] sm:$0xff] %vm151_vm0, %v2070_v19  ;;  %v2069_v15 = vadd.f32 %v2134_v50, %v2060_v53 }
 0xc23   :  { %2071 = vst.msk [vmem:[#allocation14] sm:$0xff] %vm151_vm0, %v2069_v15 }
 0xc24   :  { %2528 = shalt.err (!%p2525_p11)
}
 0xc25   :  { %2084 = dma.vmem_to_hbm [thread:$0]  %s2079_s18, 256, %s2863_s11, [#allocation4], %s2549_s22, %s2549_s22, %s2550_s23  }
 0xc26   :  { %2545 = dma.done.wait [#allocation4], 256  }
 0xc27   :  { %2546 = vsyncadd [#allocation4], 4294967040 }
 0xc28   :  { %2088 = vsyncpa [#allocation3], 1 }
 0xc29   :  { %2089 = vsyncpa [#allocation6], 1 }
 0xc2a   :  { %2090 = vsyncpa [#allocation9], 1 }
 0xc2b   :  { %2091 = vsyncpa [#allocation12], 1 }
 0xc2c   :  { %2092 = vsyncpa [#allocation4], 1 }

</bundles_post_ra>
